<compile_context>
chip_gen: v6e
topology: v6e:2x2x1
jax: 0.10.0
libtpu: 0.0.40
codegen_flags: <defaults>
</compile_context>

<pallas_src>
import functools

import jax
import jax.numpy as jnp
from jax import lax
from jax.experimental import pallas as pl
from jax.experimental.pallas import tpu as pltpu

# ----- AdvancedLoss default hyper-parameters -----
TEMPERATURE = 0.5        # SupCon temperature
BASE_TEMPERATURE = 0.07  # SupCon base temperature
ALPHA = 0.5              # contrastive weight
BETA = 0.3               # domain weight (subtracted)
GAMMA = 0.2              # consistency weight
DELTA = 0.1              # focal mix
NEG_PAD = -1e30          # finite "minus infinity" pad (slab must stay f32)


def advanced_loss_kernel(slab_ref, proj2_ref, out_ref, *, W, B):
    """slab_ref: [Rp, WP] f32 packed slab.
         rows 0:3B, cols 0:W      -> [logits|eeg_dom|face_dom] (padded w/ NEG_PAD)
         rows 0:3B, col  W        -> CE target per row (i32 bits): [t; s; s]
         rows 0:2B, col  W+1      -> SupCon label column (i32 bits): [t; t]
         row  3B,   cols 0:2B     -> SupCon label row    (i32 bits): [t; t]
       proj2_ref: [2B, D] f32 = [eeg_proj ; face_proj]
       out_ref:   [8] f32 in SMEM
    """
    threeB = 3 * B
    twoB = 2 * B

    # ---- fused softmax cross-entropy: classification + both domain heads ----
    ce_slab = slab_ref[0:threeB, 0:W]                                    # [3B, W]
    lab_col = pltpu.bitcast(slab_ref[0:threeB, W:W + 1], jnp.int32)      # [3B, 1]
    iota = lax.broadcasted_iota(jnp.int32, (threeB, W), 1)
    onehot = (iota == lab_col).astype(jnp.float32)                       # pads never selected
    m = jnp.max(ce_slab, axis=1, keepdims=True)
    lse = jnp.log(jnp.sum(jnp.exp(ce_slab - m), axis=1, keepdims=True)) + m
    tgt = jnp.sum(ce_slab * onehot, axis=1, keepdims=True)
    ce_rows = lse - tgt                                                  # [3B, 1]

    cls_rows = ce_rows[0:B]
    ce_loss = jnp.mean(cls_rows)
    pt = jnp.exp(-cls_rows)
    omp = 1.0 - pt
    focal_loss = jnp.mean(omp * omp * cls_rows)                          # focal gamma = 2.0
    cls_loss = (1.0 - DELTA) * ce_loss + DELTA * focal_loss

    # (mean over eeg rows + mean over face rows)/2 == mean over all 2B domain rows
    domain_loss = jnp.mean(ce_rows[B:threeB])

    # ---- L2 normalize stacked projections (F.normalize, eps=1e-12) in one pass ----
    proj2 = proj2_ref[...]                                               # [2B, D]
    ssq = jnp.sum(proj2 * proj2, axis=1, keepdims=True)
    inv = lax.rsqrt(jnp.maximum(ssq, 1e-24))                             # EUP
    A = proj2 * inv                                                      # unit rows
    unit_ssq = ssq * inv * inv                                           # [2B,1]; 1.0 (0 for zero rows)

    # ---- supervised contrastive loss (mode='all'), helpers de-materialized ----
    t_col = pltpu.bitcast(slab_ref[0:twoB, W + 1:W + 2], jnp.int32)      # [2B, 1]
    t_row = pltpu.bitcast(slab_ref[threeB:threeB + 1, 0:twoB], jnp.int32)  # [1, 2B] (no transpose)
    same = (t_col == t_row)                                              # [2B, 2B] bool

    adc = lax.dot_general(A, A, (((1,), (1,)), ((), ())),
                          preferred_element_type=jnp.float32) * (1.0 / TEMPERATURE)
    row_max = jnp.max(adc, axis=1, keepdims=True)
    lg = adc - row_max                                                   # [2B, 2B]
    self_lg = unit_ssq * (1.0 / TEMPERATURE) - row_max                   # diagonal of lg, no gather

    denom = jnp.sum(jnp.exp(lg), axis=1, keepdims=True) - jnp.exp(self_lg)
    sum_pos_lg = jnp.sum(jnp.where(same, lg, 0.0), axis=1, keepdims=True) - self_lg
    pos_cnt = jnp.sum(same.astype(jnp.float32), axis=1, keepdims=True) - 1.0
    mean_log_prob_pos = (sum_pos_lg - pos_cnt * jnp.log(denom)) / (pos_cnt + 1e-8)
    cont_loss = jnp.mean(-(TEMPERATURE / BASE_TEMPERATURE) * mean_log_prob_pos)

    # ---- consistency: 1 - mean cosine (rows of A are already unit-norm;
    #      the reference's re-normalization denominator is eps-level identical) ----
    cos = jnp.sum(A[0:B] * A[B:twoB], axis=1, keepdims=True)
    consistency_loss = 1.0 - jnp.mean(cos)

    total_loss = (cls_loss + ALPHA * cont_loss - BETA * domain_loss
                  + GAMMA * consistency_loss)

    out_ref[0] = total_loss
    out_ref[1] = cls_loss
    out_ref[2] = ce_loss
    out_ref[3] = focal_loss
    out_ref[4] = cont_loss
    out_ref[5] = domain_loss
    out_ref[6] = consistency_loss
    out_ref[7] = jnp.float32(0.0)


@jax.jit
def advanced_loss(logits, targets, eeg_proj, face_proj,
                  eeg_domain_pred, face_domain_pred, subject_ids):
    # Canonical cast site (kernel assumes a pure-f32 slab; NEG_PAD is only
    # safe in f32 — never downcast the slab to bf16).
    logits = logits.astype(jnp.float32)
    eeg = eeg_proj.astype(jnp.float32)
    face = face_proj.astype(jnp.float32)
    eeg_dom = eeg_domain_pred.astype(jnp.float32)
    face_dom = face_domain_pred.astype(jnp.float32)

    B, C = logits.shape
    S = eeg_dom.shape[1]
    D = eeg.shape[1]
    W = max(C, S)
    WP = max(W + 2, 2 * B)          # label cols at W, W+1; label row needs 2B lanes

    def pad_to_w(x):
        n = x.shape[1]
        if n == W:
            return x
        return jnp.pad(x, ((0, 0), (0, W - n)), constant_values=NEG_PAD)

    # --- pack everything into ONE slab DMA + ONE projection DMA (2 DMAs total) ---
    heads = jnp.concatenate(
        [pad_to_w(logits), pad_to_w(eeg_dom), pad_to_w(face_dom)], axis=0)   # [3B, W]

    t = targets.astype(jnp.int32).reshape(B, 1)
    s = subject_ids.astype(jnp.int32).reshape(B, 1)
    ce_col = jnp.concatenate([t, s, s], axis=0)                              # [3B,1] CE targets
    sup_col = jnp.concatenate([t, t, jnp.zeros_like(t)], axis=0)             # [3B,1] SupCon labels
    label_cols = lax.bitcast_convert_type(
        jnp.concatenate([ce_col, sup_col], axis=1), jnp.float32)             # i32 bits as f32

    body = jnp.concatenate([heads, label_cols], axis=1)                      # [3B, W+2]
    if WP > W + 2:
        body = jnp.pad(body, ((0, 0), (0, WP - (W + 2))))

    sup_row = lax.bitcast_convert_type(
        jnp.concatenate([t, t], axis=0).reshape(1, 2 * B), jnp.float32)      # [1, 2B] lane-major
    if WP > 2 * B:
        sup_row = jnp.pad(sup_row, ((0, 0), (0, WP - 2 * B)))

    slab = jnp.concatenate([body, sup_row], axis=0)                          # [3B+1, WP]
    R = 3 * B + 1
    Rp = ((R + 7) // 8) * 8
    if Rp > R:
        slab = jnp.pad(slab, ((0, Rp - R), (0, 0)))                          # sublane-align rows

    proj2 = jnp.concatenate([eeg, face], axis=0)                             # [2B, D]

    ce = pl.CostEstimate(
        flops=2 * (2 * B) * (2 * B) * D + 32 * (2 * B) * (2 * B) + 12 * 3 * B * W,
        transcendentals=3 * B * W + (2 * B) * (2 * B) + 6 * B,
        bytes_accessed=4 * (Rp * WP + 2 * B * D + 8),
    )

    kernel = functools.partial(advanced_loss_kernel, W=W, B=B)
    out = pl.pallas_call(
        kernel,
        out_shape=jax.ShapeDtypeStruct((8,), jnp.float32),
        in_specs=[pl.BlockSpec(memory_space=pltpu.MemorySpace.VMEM)] * 2,
        out_specs=pl.BlockSpec(memory_space=pltpu.MemorySpace.SMEM),
        compiler_params=pltpu.CompilerParams(vmem_limit_bytes=32 * 1024 * 1024),
        cost_estimate=ce,
    )(slab, proj2)

    loss_dict = {
        'total_loss': out[0], 'cls_loss': out[1], 'ce_loss': out[2],
        'focal_loss': out[3], 'cont_loss': out[4], 'domain_loss': out[5],
        'consistency_loss': out[6],
    }
    return out[0], loss_dict


# ---------------- pure-JAX reference (for correctness check) ----------------
def reference_advanced_loss(logits, targets, eeg, face, eeg_dom, face_dom, subj):
    def ce_per_row(lg, t):
        lse = jax.nn.logsumexp(lg, axis=1)
        return lse - jnp.take_along_axis(lg, t[:, None], axis=1)[:, 0]

    ce_rows = ce_per_row(logits, targets)
    ce_loss = ce_rows.mean()
    pt = jnp.exp(-ce_rows)
    focal_loss = ((1 - pt) ** 2 * ce_rows).mean()
    cls_loss = (1 - DELTA) * ce_loss + DELTA * focal_loss

    eeg_n = eeg / jnp.maximum(jnp.linalg.norm(eeg, axis=1, keepdims=True), 1e-12)
    face_n = face / jnp.maximum(jnp.linalg.norm(face, axis=1, keepdims=True), 1e-12)

    B = logits.shape[0]
    A = jnp.concatenate([eeg_n, face_n], axis=0)
    adc = (A @ A.T) / TEMPERATURE
    lg = adc - adc.max(axis=1, keepdims=True)
    mask = (targets[:, None] == targets[None, :]).astype(jnp.float32)
    mask = jnp.tile(mask, (2, 2))
    lmask = 1.0 - jnp.eye(2 * B, dtype=jnp.float32)
    mask = mask * lmask
    exp_lg = jnp.exp(lg) * lmask
    log_prob = lg - jnp.log(exp_lg.sum(1, keepdims=True))
    mlp = (mask * log_prob).sum(1) / (mask.sum(1) + 1e-8)
    cont_loss = (-(TEMPERATURE / BASE_TEMPERATURE) * mlp).mean()

    dom = (ce_per_row(eeg_dom, subj).mean() + ce_per_row(face_dom, subj).mean()) / 2.0
    cos = jnp.sum(eeg_n * face_n, axis=1) / jnp.maximum(
        jnp.linalg.norm(eeg_n, axis=1) * jnp.linalg.norm(face_n, axis=1), 1e-8)
    cons = 1.0 - cos.mean()
    total = cls_loss + ALPHA * cont_loss - BETA * dom + GAMMA * cons
    return total


if __name__ == "__main__":
    B, C, D, S = 8, 2, 32, 32  # batch, num_classes, proj dim, num_subjects
    key = jax.random.PRNGKey(0)
    k = jax.random.split(key, 7)
    logits = jax.random.normal(k[0], (B, C), jnp.float32)
    targets = jax.random.randint(k[1], (B,), 0, C, jnp.int32)
    eeg_proj = jax.random.normal(k[2], (B, D), jnp.float32)
    face_proj = jax.random.normal(k[3], (B, D), jnp.float32)
    eeg_dom = jax.random.normal(k[4], (B, S), jnp.float32)
    face_dom = jax.random.normal(k[5], (B, S), jnp.float32)
    subject_ids = jax.random.randint(k[6], (B,), 0, S, jnp.int32)

    total, loss_dict = advanced_loss(logits, targets, eeg_proj, face_proj,
                                     eeg_dom, face_dom, subject_ids)
    total = jax.block_until_ready(total)

    ref_total = reference_advanced_loss(logits, targets, eeg_proj, face_proj,
                                        eeg_dom, face_dom, subject_ids)
    assert jnp.allclose(total, ref_total, rtol=2e-3, atol=2e-3), (total, ref_total)

    print("KERNEL_OK")
</pallas_src>

<mosaic_0001>
module attributes {stable_mosaic.version = 11 : i64} {
  func.func @advanced_loss_kernel(%arg0: memref<32x34xf32, #tpu.memory_space<vmem>>, %arg1: memref<16x32xf32, #tpu.memory_space<vmem>>, %arg2: memref<8xf32, #tpu.memory_space<smem>>) attributes {dimension_semantics = [], scalar_prefetch = 0 : i64, scratch_operands = 0 : i64, tpu.core_type = #tpu.core_type<tc>} {
    %c0 = arith.constant 0 : index
    %c0_0 = arith.constant 0 : index
    %0 = vector.load %arg0[%c0, %c0_0] : memref<32x34xf32, #tpu.memory_space<vmem>>, vector<24x32xf32>
    %c0_1 = arith.constant 0 : index
    %c32 = arith.constant 32 : index
    %1 = vector.load %arg0[%c0_1, %c32] : memref<32x34xf32, #tpu.memory_space<vmem>>, vector<24x1xf32>
    %2 = tpu.bitcast %1 : vector<24x1xf32> -> vector<24x1xi32>
    %3 = tpu.iota {dimensions = array<i32: 1>} : vector<24x32xi32>
    %4 = vector.broadcast %2 : vector<24x1xi32> to vector<24x32xi32>
    %5 = arith.cmpi eq, %3, %4 : vector<24x32xi32>
    %6 = arith.extui %5 : vector<24x32xi1> to vector<24x32xi32>
    %7 = arith.sitofp %6 : vector<24x32xi32> to vector<24x32xf32>
    %cst = arith.constant dense<0xFF800000> : vector<24xf32>
    %8 = vector.multi_reduction <maximumf>, %0, %cst [1] : vector<24x32xf32> to vector<24xf32>
    %9 = vector.shape_cast %8 : vector<24xf32> to vector<24x1xf32>
    %10 = vector.broadcast %9 : vector<24x1xf32> to vector<24x32xf32>
    %11 = arith.subf %0, %10 : vector<24x32xf32>
    %12 = math.exp %11 : vector<24x32xf32>
    %cst_2 = arith.constant dense<0.000000e+00> : vector<24xf32>
    %13 = vector.multi_reduction <add>, %12, %cst_2 [1] : vector<24x32xf32> to vector<24xf32>
    %14 = vector.shape_cast %13 : vector<24xf32> to vector<24x1xf32>
    %15 = math.log %14 : vector<24x1xf32>
    %16 = arith.addf %15, %9 : vector<24x1xf32>
    %17 = arith.mulf %0, %7 : vector<24x32xf32>
    %cst_3 = arith.constant dense<0.000000e+00> : vector<24xf32>
    %18 = vector.multi_reduction <add>, %17, %cst_3 [1] : vector<24x32xf32> to vector<24xf32>
    %19 = vector.shape_cast %18 : vector<24xf32> to vector<24x1xf32>
    %20 = arith.subf %16, %19 : vector<24x1xf32>
    %21 = vector.extract_strided_slice %20 {offsets = [0, 0], sizes = [8, 1], strides = [1, 1]} : vector<24x1xf32> to vector<8x1xf32>
    %22 = vector.shape_cast %21 : vector<8x1xf32> to vector<1x8x1xf32>
    %cst_4 = arith.constant dense<0.000000e+00> : vector<1xf32>
    %23 = vector.multi_reduction <add>, %22, %cst_4 [1, 2] : vector<1x8x1xf32> to vector<1xf32>
    %24 = vector.shape_cast %23 : vector<1xf32> to vector<1x1x1xf32>
    %25 = vector.extract %24[0, 0, 0] : f32 from vector<1x1x1xf32>
    %cst_5 = arith.constant 8.000000e+00 : f32
    %26 = arith.divf %25, %cst_5 : f32
    %cst_6 = arith.constant 0.000000e+00 : f32
    %27 = vector.broadcast %cst_6 : f32 to vector<8x1xf32>
    %28 = arith.subf %27, %21 : vector<8x1xf32>
    %29 = math.exp %28 : vector<8x1xf32>
    %cst_7 = arith.constant 1.000000e+00 : f32
    %30 = vector.broadcast %cst_7 : f32 to vector<8x1xf32>
    %31 = arith.subf %30, %29 : vector<8x1xf32>
    %32 = arith.mulf %31, %31 : vector<8x1xf32>
    %33 = arith.mulf %32, %21 : vector<8x1xf32>
    %34 = vector.shape_cast %33 : vector<8x1xf32> to vector<1x8x1xf32>
    %cst_8 = arith.constant dense<0.000000e+00> : vector<1xf32>
    %35 = vector.multi_reduction <add>, %34, %cst_8 [1, 2] : vector<1x8x1xf32> to vector<1xf32>
    %36 = vector.shape_cast %35 : vector<1xf32> to vector<1x1x1xf32>
    %37 = vector.extract %36[0, 0, 0] : f32 from vector<1x1x1xf32>
    %cst_9 = arith.constant 8.000000e+00 : f32
    %38 = arith.divf %37, %cst_9 : f32
    %cst_10 = arith.constant 0.899999976 : f32
    %39 = arith.mulf %cst_10, %26 : f32
    %cst_11 = arith.constant 1.000000e-01 : f32
    %40 = arith.mulf %cst_11, %38 : f32
    %41 = arith.addf %39, %40 : f32
    %42 = vector.extract_strided_slice %20 {offsets = [8, 0], sizes = [16, 1], strides = [1, 1]} : vector<24x1xf32> to vector<16x1xf32>
    %43 = vector.shape_cast %42 : vector<16x1xf32> to vector<1x16x1xf32>
    %cst_12 = arith.constant dense<0.000000e+00> : vector<1xf32>
    %44 = vector.multi_reduction <add>, %43, %cst_12 [1, 2] : vector<1x16x1xf32> to vector<1xf32>
    %45 = vector.shape_cast %44 : vector<1xf32> to vector<1x1x1xf32>
    %46 = vector.extract %45[0, 0, 0] : f32 from vector<1x1x1xf32>
    %cst_13 = arith.constant 1.600000e+01 : f32
    %47 = arith.divf %46, %cst_13 : f32
    %c0_14 = arith.constant 0 : index
    %c0_15 = arith.constant 0 : index
    %48 = vector.load %arg1[%c0_14, %c0_15] : memref<16x32xf32, #tpu.memory_space<vmem>>, vector<16x32xf32>
    %49 = arith.mulf %48, %48 : vector<16x32xf32>
    %cst_16 = arith.constant dense<0.000000e+00> : vector<16xf32>
    %50 = vector.multi_reduction <add>, %49, %cst_16 [1] : vector<16x32xf32> to vector<16xf32>
    %51 = vector.shape_cast %50 : vector<16xf32> to vector<16x1xf32>
    %cst_17 = arith.constant 1.000000e-24 : f32
    %52 = vector.broadcast %cst_17 : f32 to vector<16x1xf32>
    %53 = arith.maximumf %51, %52 : vector<16x1xf32>
    %54 = math.rsqrt %53 : vector<16x1xf32>
    %55 = vector.broadcast %54 : vector<16x1xf32> to vector<16x32xf32>
    %56 = arith.mulf %48, %55 : vector<16x32xf32>
    %57 = arith.mulf %51, %54 : vector<16x1xf32>
    %58 = arith.mulf %57, %54 : vector<16x1xf32>
    %c0_18 = arith.constant 0 : index
    %c33 = arith.constant 33 : index
    %59 = vector.load %arg0[%c0_18, %c33] : memref<32x34xf32, #tpu.memory_space<vmem>>, vector<16x1xf32>
    %60 = tpu.bitcast %59 : vector<16x1xf32> -> vector<16x1xi32>
    %c24 = arith.constant 24 : index
    %c0_19 = arith.constant 0 : index
    %61 = vector.load %arg0[%c24, %c0_19] : memref<32x34xf32, #tpu.memory_space<vmem>>, vector<1x16xf32>
    %62 = tpu.bitcast %61 : vector<1x16xf32> -> vector<1x16xi32>
    %63 = vector.broadcast %60 : vector<16x1xi32> to vector<16x16xi32>
    %64 = vector.broadcast %62 : vector<1x16xi32> to vector<16x16xi32>
    %65 = arith.cmpi eq, %63, %64 : vector<16x16xi32>
    %cst_20 = arith.constant dense<0.000000e+00> : vector<16x16xf32>
    %66 = tpu.matmul %56, %56, %cst_20 {dimension_numbers = #tpu.dot_dimension_numbers<[1], [1], [0], [0], [0, 0, 1, 0], [], []>} : vector<16x32xf32>, vector<16x32xf32>, vector<16x16xf32> -> vector<16x16xf32>
    %cst_21 = arith.constant 2.000000e+00 : f32
    %67 = vector.broadcast %cst_21 : f32 to vector<16x16xf32>
    %68 = arith.mulf %66, %67 : vector<16x16xf32>
    %cst_22 = arith.constant dense<0xFF800000> : vector<16xf32>
    %69 = vector.multi_reduction <maximumf>, %68, %cst_22 [1] : vector<16x16xf32> to vector<16xf32>
    %70 = vector.shape_cast %69 : vector<16xf32> to vector<16x1xf32>
    %71 = vector.broadcast %70 : vector<16x1xf32> to vector<16x16xf32>
    %72 = arith.subf %68, %71 : vector<16x16xf32>
    %cst_23 = arith.constant 2.000000e+00 : f32
    %73 = vector.broadcast %cst_23 : f32 to vector<16x1xf32>
    %74 = arith.mulf %58, %73 : vector<16x1xf32>
    %75 = arith.subf %74, %70 : vector<16x1xf32>
    %76 = math.exp %72 : vector<16x16xf32>
    %cst_24 = arith.constant dense<0.000000e+00> : vector<16xf32>
    %77 = vector.multi_reduction <add>, %76, %cst_24 [1] : vector<16x16xf32> to vector<16xf32>
    %78 = vector.shape_cast %77 : vector<16xf32> to vector<16x1xf32>
    %79 = math.exp %75 : vector<16x1xf32>
    %80 = arith.subf %78, %79 : vector<16x1xf32>
    %cst_25 = arith.constant 0.000000e+00 : f32
    %81 = vector.broadcast %cst_25 : f32 to vector<16x16xf32>
    %82 = arith.select %65, %72, %81 : vector<16x16xi1>, vector<16x16xf32>
    %cst_26 = arith.constant dense<0.000000e+00> : vector<16xf32>
    %83 = vector.multi_reduction <add>, %82, %cst_26 [1] : vector<16x16xf32> to vector<16xf32>
    %84 = vector.shape_cast %83 : vector<16xf32> to vector<16x1xf32>
    %85 = arith.subf %84, %75 : vector<16x1xf32>
    %86 = arith.extui %65 : vector<16x16xi1> to vector<16x16xi32>
    %87 = arith.sitofp %86 : vector<16x16xi32> to vector<16x16xf32>
    %cst_27 = arith.constant dense<0.000000e+00> : vector<16xf32>
    %88 = vector.multi_reduction <add>, %87, %cst_27 [1] : vector<16x16xf32> to vector<16xf32>
    %89 = vector.shape_cast %88 : vector<16xf32> to vector<16x1xf32>
    %cst_28 = arith.constant 1.000000e+00 : f32
    %90 = vector.broadcast %cst_28 : f32 to vector<16x1xf32>
    %91 = arith.subf %89, %90 : vector<16x1xf32>
    %92 = math.log %80 : vector<16x1xf32>
    %93 = arith.mulf %91, %92 : vector<16x1xf32>
    %94 = arith.subf %85, %93 : vector<16x1xf32>
    %cst_29 = arith.constant 9.99999993E-9 : f32
    %95 = vector.broadcast %cst_29 : f32 to vector<16x1xf32>
    %96 = arith.addf %91, %95 : vector<16x1xf32>
    %97 = arith.divf %94, %96 : vector<16x1xf32>
    %cst_30 = arith.constant -7.14285707 : f32
    %98 = vector.broadcast %cst_30 : f32 to vector<16x1xf32>
    %99 = arith.mulf %98, %97 : vector<16x1xf32>
    %100 = vector.shape_cast %99 : vector<16x1xf32> to vector<1x16x1xf32>
    %cst_31 = arith.constant dense<0.000000e+00> : vector<1xf32>
    %101 = vector.multi_reduction <add>, %100, %cst_31 [1, 2] : vector<1x16x1xf32> to vector<1xf32>
    %102 = vector.shape_cast %101 : vector<1xf32> to vector<1x1x1xf32>
    %103 = vector.extract %102[0, 0, 0] : f32 from vector<1x1x1xf32>
    %cst_32 = arith.constant 1.600000e+01 : f32
    %104 = arith.divf %103, %cst_32 : f32
    %105 = vector.extract_strided_slice %56 {offsets = [0, 0], sizes = [8, 32], strides = [1, 1]} : vector<16x32xf32> to vector<8x32xf32>
    %106 = vector.extract_strided_slice %56 {offsets = [8, 0], sizes = [8, 32], strides = [1, 1]} : vector<16x32xf32> to vector<8x32xf32>
    %107 = arith.mulf %105, %106 : vector<8x32xf32>
    %cst_33 = arith.constant dense<0.000000e+00> : vector<8xf32>
    %108 = vector.multi_reduction <add>, %107, %cst_33 [1] : vector<8x32xf32> to vector<8xf32>
    %109 = vector.shape_cast %108 : vector<8xf32> to vector<8x1xf32>
    %110 = vector.shape_cast %109 : vector<8x1xf32> to vector<1x8x1xf32>
    %cst_34 = arith.constant dense<0.000000e+00> : vector<1xf32>
    %111 = vector.multi_reduction <add>, %110, %cst_34 [1, 2] : vector<1x8x1xf32> to vector<1xf32>
    %112 = vector.shape_cast %111 : vector<1xf32> to vector<1x1x1xf32>
    %113 = vector.extract %112[0, 0, 0] : f32 from vector<1x1x1xf32>
    %cst_35 = arith.constant 8.000000e+00 : f32
    %114 = arith.divf %113, %cst_35 : f32
    %cst_36 = arith.constant 1.000000e+00 : f32
    %115 = arith.subf %cst_36, %114 : f32
    %cst_37 = arith.constant 5.000000e-01 : f32
    %116 = arith.mulf %cst_37, %104 : f32
    %117 = arith.addf %41, %116 : f32
    %cst_38 = arith.constant 3.000000e-01 : f32
    %118 = arith.mulf %cst_38, %47 : f32
    %119 = arith.subf %117, %118 : f32
    %cst_39 = arith.constant 2.000000e-01 : f32
    %120 = arith.mulf %cst_39, %115 : f32
    %121 = arith.addf %119, %120 : f32
    %c0_40 = arith.constant 0 : index
    %122 = memref.load %arg2[%c0_40] : memref<8xf32, #tpu.memory_space<smem>>
    memref.store %121, %arg2[%c0_40] : memref<8xf32, #tpu.memory_space<smem>>
    %c1 = arith.constant 1 : index
    %123 = memref.load %arg2[%c1] : memref<8xf32, #tpu.memory_space<smem>>
    memref.store %41, %arg2[%c1] : memref<8xf32, #tpu.memory_space<smem>>
    %c2 = arith.constant 2 : index
    %124 = memref.load %arg2[%c2] : memref<8xf32, #tpu.memory_space<smem>>
    memref.store %26, %arg2[%c2] : memref<8xf32, #tpu.memory_space<smem>>
    %c3 = arith.constant 3 : index
    %125 = memref.load %arg2[%c3] : memref<8xf32, #tpu.memory_space<smem>>
    memref.store %38, %arg2[%c3] : memref<8xf32, #tpu.memory_space<smem>>
    %c4 = arith.constant 4 : index
    %126 = memref.load %arg2[%c4] : memref<8xf32, #tpu.memory_space<smem>>
    memref.store %104, %arg2[%c4] : memref<8xf32, #tpu.memory_space<smem>>
    %c5 = arith.constant 5 : index
    %127 = memref.load %arg2[%c5] : memref<8xf32, #tpu.memory_space<smem>>
    memref.store %47, %arg2[%c5] : memref<8xf32, #tpu.memory_space<smem>>
    %c6 = arith.constant 6 : index
    %128 = memref.load %arg2[%c6] : memref<8xf32, #tpu.memory_space<smem>>
    memref.store %115, %arg2[%c6] : memref<8xf32, #tpu.memory_space<smem>>
    %cst_41 = arith.constant 0.000000e+00 : f32
    %c7 = arith.constant 7 : index
    %129 = memref.load %arg2[%c7] : memref<8xf32, #tpu.memory_space<smem>>
    memref.store %cst_41, %arg2[%c7] : memref<8xf32, #tpu.memory_space<smem>>
    return
  }
}

</mosaic_0001>

<bundles_post_ra>
// kernel: advanced_loss.1
= control target key start
LH: loop header
LB: loop body
LE: loop exit
PB: predicated region body
PF: predicated region fallthrough
CT: control target
= control target key end

     0   :  { %vm38_vm0 = vcmask 261120   ;;  %s608_s0 = inlined_call_operand.vmem [shape: f32[32,34], index: 0, kind: input, shape index: {}]   ;;  %s609_s1 = inlined_call_operand.vmem [shape: f32[16,32], index: 1, kind: input, shape index: {}]   ;;  %s610_s2 = inlined_call_operand.vmem [shape: f32[8], index: 2, kind: output, shape index: {}]  }
   0x1   :  { %v142_v0 = vld [vmem:[%s609_s1 + $0x8] sm:$0xff]  ;;  %v141_v1 = vld [vmem:[%s609_s1] sm:$0xff] }
   0x2   :  { %7 = vsyncpa [#allocation3], 0  ;;  %v144_v2 = vmul.f32 %v142_v0, %v142_v0  ;;  %v143_v3 = vmul.f32 %v141_v1, %v141_v1  ;;  %v12_v6 = vld [vmem:[%s608_s0] sm:$0xff]  ;;  %v523_v7 = vld [vmem:[%s608_s0 + $0x8] sm:$0xff]  ;;  %v489_v9 = vmov 32   ;;  %v490_v24 = vmov 33  }
   0x3   :  { %v39_v8 = vsel %vm38_vm0, %v12_v6, -inf  ;;  %437 = vset.pattern.permute.xlu1 %v489_v9  ;;  %v42_v10 = vsel %vm38_vm0, %v523_v7, -inf  ;;  %v539_v22 = vld [vmem:[%s608_s0 + $0x10] sm:$0xff]  ;;  %438 = vset.pattern.permute.xlu0 %v490_v24  ;;  %vm262_vm1 = vcmask 130048   ;;  %v18_v34 = vlaneseq  ;;  %v402_v63 = vld [vmem:[%s608_s0 + $0x18] ss:$0 sm:$0xff] }
   0x4   :  { %v148_v4 = vsel %vm38_vm0, %v144_v2, 0.0  ;;  %v145_v5 = vsel %vm38_vm0, %v143_v3, 0.0  ;;  %40 = vmax.xlane.f32.xlu1 %v39_v8  ;;  %v45_v23 = vsel %vm38_vm0, %v539_v22, -inf  ;;  %v491_v40 = vmov 0.0   ;;  %s492_s0 = smov 0.0   ;;  %s390_s11 = sshll.u32 %s610_s2, 4  ;;  %s391_s11 = int_to_ptr.vmem [resolvable:$true] %s390_s11 }
   0x5   :  { %149 = vadd.xlane.f32.xlu0 %v148_v4  ;;  %v554_v36 = vand.u32 127, %v18_v34  ;;  %vm90_vm7 = vcmask 7168   ;;  %383 = sst [smem:[#allocation2 + $0x7]] %s492_s0  ;;  %s475_s15 = scalar_lea.vmem %s391_s11, 16 }
   0x6   :  { %p476_p0 = scmp.ne.s32.totalorder %s391_s11, %s475_s15  ;;  %p480_p1 = scmp.lt.s32.totalorder %s391_s11, %s391_s11 }
   0x7   :  { %p481_p2 = scmp.lt.s32.totalorder %s475_s15, %s475_s15 }
   0x8   :  { %43 = vmax.xlane.f32.xlu1 %v42_v10 }
   0x9   :  { %146 = vadd.xlane.f32.xlu0 %v145_v5  ;;  %p482_p3 = por %p481_p2, %p480_p1 }
   0xb   :  { %p483_p4 = pnand %p482_p3, %p476_p0 }
   0xd   :  { %46 = vmax.xlane.f32.xlu0 %v45_v23 }
  0x19   :  { %21 = vperm.xlu1 %437, %v12_v6  }
  0x1d   :  { %439 = vset.pattern.permute.xlu1 %v490_v24 }
  0x8d   :  { %v546_v31 = vpop.xlane.xlu1 %40 }
  0x8e   :  { %v150_v11 = vpop.xlane.xlu0 %149  ;;  %v48_v37 = vsub.f32 %v12_v6, %v546_v31 }
  0x8f   :  { %v152_v12 = vmax.f32 %v150_v11, 1e-24 }
  0x90   :  { %v51_v39 = vmul.f32 1.442695, %v48_v37 }
  0x91   :  { %441 = vrsqrt.f32 %v152_v12  ;;  %v549_v32 = vpop.xlane.xlu1 %43 }
  0x92   :  { %v147_v13 = vpop.xlane.xlu0 %146  ;;  %v49_v33 = vsub.f32 %v523_v7, %v549_v32 }
  0x93   :  { %v151_v14 = vmax.f32 %v147_v13, 1e-24 }
  0x94   :  { %v53_v35 = vmul.f32 1.442695, %v49_v33 }
  0x95   :  { %443 = vrsqrt.f32 %v151_v14  ;;  %v22_v38 = vpop.permute.xlu1 %21 }
  0x96   :  { %445 = vpow2.f32 %v53_v35  ;;  %vm29_vm2 = vcmp.eq.s32.totalorder %v554_v36, %v22_v38  ;;  %v561_v49 = vpop.xlane.xlu0 %46 }
  0x97   :  { %v399_v41 = vsel %vm29_vm2, 1.0, %v491_v40  ;;  %447 = vpow2.f32 %v51_v39  ;;  %v50_v62 = vsub.f32 %v539_v22, %v561_v49 }
  0x98   :  { %v75_v42 = vmul.f32 %v399_v41, %v12_v6 }
  0x99   :  { %v55_v4 = vmul.f32 1.442695, %v50_v62 }
  0x9a   :  { %v78_v43 = vsel %vm38_vm0, %v75_v42, 0.0 }
  0x9e   :  { %v442_v15 = vpop.eup %441 }
  0x9f   :  { %v158_v16 = vmul.f32 %v442_v15, %v150_v11  ;;  %v156_v17 = vmul.f32 %v442_v15, %v142_v0 }
  0xa1   :  { %v160_v18 = vmul.f32 %v442_v15, %v158_v16  ;;  %415 = vmatprep.subr.msk.mxu0 %vm38_vm0, %v156_v17 }
  0xa2   :  { %v444_v19 = vpop.eup %443  ;;  %416 = vmatpush3.xpose.msk.msra.mxu0 %vm38_vm0, %v156_v17 }
  0xa3   :  { %v155_v20 = vmul.f32 %v444_v19, %v141_v1  ;;  %v446_v44 = vpop.eup %445  ;;  %v157_v48 = vmul.f32 %v444_v19, %v147_v13  ;;  %v272_v51 = vmul.f32 2.0, %v160_v18 }
  0xa4   :  { %v60_v45 = vsel %vm38_vm0, %v446_v44, 0.0  ;;  %v448_v46 = vpop.eup %447 }
  0xa5   :  { %417 = vmatprep.subr.msk.mxu0 %vm38_vm0, %v155_v20  ;;  %419 = vmatprep.mubr.msk.f32.mxu0 %vm38_vm0, %v155_v20  ;;  %v532_v21 = vmul.f32 %v156_v17, %v155_v20  ;;  %v57_v47 = vsel %vm38_vm0, %v448_v46, 0.0  ;;  %v159_v50 = vmul.f32 %v444_v19, %v157_v48 }
  0xa6   :  { %418 = vmatpush3.xpose.msk.msra.mxu0 %vm38_vm0, %v155_v20 }
  0xa7   :  { %v271_v55 = vmul.f32 2.0, %v159_v50  ;;  %v345_v13 = vsel %vm38_vm0, %v532_v21, 0.0 }
  0xa9   :  { %420 = vmatmul.mubr.msk.f32.vlgmr.msra.gmra.mxu0 %vm38_vm0, %v156_v17 }
 0x169   :  { %v421_v25 = vpop.f32.mrf.mxu0 }
 0x16a   :  { %v261_v26 = vmul.f32 2.0, %v421_v25 }
 0x16b   :  { %v251_v27 = vpop.f32.mrf.mxu0 }
 0x16c   :  { %v260_v28 = vmul.f32 2.0, %v251_v27  ;;  %v266_v29 = vsel %vm262_vm1, %v261_v26, -inf }
 0x16d   :  { %267 = vmax.xlane.f32.xlu0 %v266_v29 }
 0x16e   :  { %v263_v30 = vsel %vm262_vm1, %v260_v28, -inf }
 0x16f   :  { %264 = vmax.xlane.f32.xlu1 %v263_v30 }
 0x180   :  { %171 = vperm.xlu1 %439, %v523_v7  }
 0x183   :  { %168 = vperm.xlu0 %438, %v12_v6  }
 0x184   :  { %440 = vset.pattern.permute.xlu1 %v489_v9 }
 0x185   :  { %24 = vperm.xlu1 %440, %v523_v7  }
 0x189   :  { %27 = vperm.xlu1 %440, %v539_v22  }
 0x1a2   :  { %79 = vadd.xlane.f32.xlu0 %v78_v43 }
 0x1a6   :  { %61 = vadd.xlane.f32.xlu0 %v60_v45 }
 0x1ad   :  { %58 = vadd.xlane.f32.xlu1 %v57_v47 }
 0x1f6   :  { %v268_v52 = vpop.xlane.xlu0 %267 }
 0x1f7   :  { %v270_v53 = vsub.f32 %v261_v26, %v268_v52  ;;  %v563_v54 = vsub.f32 %v272_v51, %v268_v52 }
 0x1f8   :  { %v265_v56 = vpop.xlane.xlu1 %264 }
 0x1f9   :  { %v277_v57 = vmul.f32 1.442695, %v270_v53  ;;  %v269_v58 = vsub.f32 %v260_v28, %v265_v56  ;;  %v565_v59 = vsub.f32 %v271_v55, %v265_v56  ;;  %v287_v41 = vmul.f32 1.442695, %v563_v54 }
 0x1fb   :  { %449 = vpow2.f32 %v277_v57  ;;  %v275_v60 = vmul.f32 1.442695, %v269_v58 }
 0x1fc   :  { %v172_v61 = vpop.permute.xlu1 %171 }
 0x1fd   :  { %451 = vpow2.f32 %v275_v60  ;;  %vm178_vm5 = vcmp.eq.s32.totalorder %v172_v61, %v402_v63 }
 0x1fe   :  { %v169_v0 = vpop.permute.xlu0 %168  ;;  %453 = vpow2.f32 %v55_v4  ;;  %v408_v15 = vsel %vm178_vm5, 1.0, %v491_v40  ;;  %v292_v21 = vsel %vm178_vm5, %v270_v53, 0.0 }
 0x1ff   :  { %vm177_vm3 = vcmp.eq.s32.totalorder %v169_v0, %v402_v63  ;;  %v296_v24 = vsel %vm262_vm1, %v292_v21, 0.0 }
 0x200   :  { %v25_v1 = vpop.permute.xlu1 %24  ;;  %v291_v2 = vsel %vm177_vm3, %v269_v58, 0.0  ;;  %v407_v3 = vsel %vm177_vm3, 1.0, %v491_v40 }
 0x201   :  { %vm30_vm4 = vcmp.eq.s32.totalorder %v554_v36, %v25_v1  ;;  %v293_v5 = vsel %vm262_vm1, %v291_v2, 0.0  ;;  %v305_v6 = vsel %vm262_vm1, %v407_v3, 0.0 }
 0x202   :  { %v400_v8 = vsel %vm30_vm4, 1.0, %v491_v40  ;;  %294 = vadd.xlane.f32.xlu0 %v293_v5  ;;  %306 = vadd.xlane.f32.xlu1 %v305_v6 }
 0x203   :  { %v76_v9 = vmul.f32 %v400_v8, %v523_v7  ;;  %v308_v7 = vsel %vm262_vm1, %v408_v15, 0.0 }
 0x204   :  { %v28_v17 = vpop.permute.xlu1 %27 }
 0x205   :  { %v81_v10 = vsel %vm38_vm0, %v76_v9, 0.0  ;;  %vm31_vm6 = vcmp.eq.s32.totalorder %v554_v36, %v28_v17 }
 0x206   :  { %82 = vadd.xlane.f32.xlu0 %v81_v10  ;;  %v401_v19 = vsel %vm31_vm6, 1.0, %v491_v40 }
 0x207   :  { %v77_v23 = vmul.f32 %v401_v19, %v539_v22 }
 0x208   :  { %v450_v11 = vpop.eup %449 }
 0x209   :  { %v282_v12 = vsel %vm262_vm1, %v450_v11, 0.0  ;;  %v84_v25 = vsel %vm38_vm0, %v77_v23, 0.0 }
 0x20a   :  { %v452_v14 = vpop.eup %451  ;;  %283 = vadd.xlane.f32.xlu1 %v282_v12  ;;  %346 = vadd.xlane.f32.xlu0 %v345_v13 }
 0x20b   :  { %v279_v16 = vsel %vm262_vm1, %v452_v14, 0.0  ;;  %v454_v18 = vpop.eup %453 }
 0x20c   :  { %v63_v20 = vsel %vm38_vm0, %v454_v18, 0.0 }
 0x20e   :  { %280 = vadd.xlane.f32.xlu1 %v279_v16 }
 0x212   :  { %309 = vadd.xlane.f32.xlu1 %v308_v7 }
 0x216   :  { %64 = vadd.xlane.f32.xlu1 %v63_v20 }
 0x21a   :  { %297 = vadd.xlane.f32.xlu1 %v296_v24 }
 0x21e   :  { %85 = vadd.xlane.f32.xlu1 %v84_v25 }
 0x22b   :  { %v80_v30 = vpop.xlane.xlu0 %79 }
 0x22f   :  { %v62_v50 = vpop.xlane.xlu0 %61 }
 0x236   :  { %v59_v26 = vpop.xlane.xlu1 %58 }
 0x237   :  { %455 = vlog2.f32 %v59_v26 }
 0x244   :  { %v456_v27 = vpop.eup %455 }
 0x245   :  { %v67_v28 = vmul.f32 0.6931472, %v456_v27 }
 0x247   :  { %v72_v29 = vadd.f32 %v67_v28, %v546_v31  ;;  %v285_v31 = vmul.f32 1.442695, %v565_v59 }
 0x249   :  { %v87_v33 = vsub.f32 %v72_v29, %v80_v30 }
 0x24b   :  { %v91_v34 = vsel %vm90_vm7, %v87_v33, 0.0  ;;  %v104_v35 = vsub.f32 0.0, %v87_v33 }
 0x24c   :  { %92 = vadd.xlane.f32.xlu1 %v91_v34 }
 0x24d   :  { %v105_v22 = vmul.f32 1.442695, %v104_v35 }
 0x24f   :  { %457 = vpow2.f32 %v105_v22 }
 0x250   :  { %459 = vpow2.f32 %v287_v41 }
 0x251   :  { %461 = vpow2.f32 %v285_v31 }
 0x25c   :  { %v458_v36 = vpop.eup %457 }
 0x25d   :  { %v107_v37 = vsub.f32 1.0, %v458_v36  ;;  %v460_v43 = vpop.eup %459 }
 0x25e   :  { %v462_v46 = vpop.eup %461 }
 0x25f   :  { %v108_v38 = vmul.f32 %v107_v37, %v107_v37 }
 0x261   :  { %v109_v39 = vmul.f32 %v108_v38, %v87_v33 }
 0x263   :  { %v110_v40 = vsel %vm90_vm7, %v109_v39, 0.0 }
 0x264   :  { %111 = vadd.xlane.f32.xlu0 %v110_v40 }
 0x28b   :  { %v307_v42 = vpop.xlane.xlu1 %306  ;;  %v295_v62 = vpop.xlane.xlu0 %294 }
 0x28c   :  { %v409_v47 = vadd.f32 -1.0, %v307_v42  ;;  %v299_v3 = vsub.f32 %v295_v62, %v565_v59 }
 0x28e   :  { %v321_v52 = vadd.f32 1e-08, %v409_v47 }
 0x28f   :  { %v83_v13 = vpop.xlane.xlu0 %82 }
 0x293   :  { %v284_v44 = vpop.xlane.xlu1 %283 }
 0x294   :  { %v290_v45 = vsub.f32 %v284_v44, %v460_v43 }
 0x296   :  { %463 = vlog2.f32 %v290_v45 }
 0x297   :  { %v281_v48 = vpop.xlane.xlu1 %280 }
 0x298   :  { %v289_v51 = vsub.f32 %v281_v48, %v462_v46 }
 0x29a   :  { %465 = vlog2.f32 %v289_v51 }
 0x29b   :  { %467 = vlog2.f32 %v62_v50  ;;  %v310_v53 = vpop.xlane.xlu1 %309 }
 0x29c   :  { %v410_v55 = vadd.f32 -1.0, %v310_v53  ;;  %469 = vrcp.f32 %v321_v52 }
 0x29e   :  { %v322_v56 = vadd.f32 1e-08, %v410_v55 }
 0x29f   :  { %v65_v57 = vpop.xlane.xlu1 %64 }
 0x2a0   :  { %471 = vrcp.f32 %v322_v56 }
 0x2a1   :  { %473 = vlog2.f32 %v65_v57 }
 0x2a3   :  { %v464_v58 = vpop.eup %463  ;;  %v298_v63 = vpop.xlane.xlu1 %297 }
 0x2a4   :  { %v316_v60 = vmul.f32 0.6931472, %v464_v58  ;;  %v300_v5 = vsub.f32 %v298_v63, %v563_v54 }
 0x2a6   :  { %v318_v2 = vmul.f32 %v410_v55, %v316_v60 }
 0x2a7   :  { %v466_v61 = vpop.eup %465  ;;  %v86_v20 = vpop.xlane.xlu1 %85 }
 0x2a8   :  { %v468_v0 = vpop.eup %467  ;;  %v314_v1 = vmul.f32 0.6931472, %v466_v61  ;;  %v320_v9 = vsub.f32 %v300_v5, %v318_v2 }
 0x2a9   :  { %v69_v6 = vmul.f32 0.6931472, %v468_v0  ;;  %v470_v8 = vpop.eup %469 }
 0x2aa   :  { %v317_v4 = vmul.f32 %v409_v47, %v314_v1 }
 0x2ab   :  { %v73_v16 = vadd.f32 %v69_v6, %v549_v32  ;;  %v347_v32 = vpop.xlane.xlu0 %346 }
 0x2ac   :  { %v319_v10 = vsub.f32 %v299_v3, %v317_v4  ;;  %v348_v28 = vsel %vm90_vm7, %v347_v32, 0.0 }
 0x2ad   :  { %v472_v11 = vpop.eup %471  ;;  %v88_v19 = vsub.f32 %v73_v16, %v83_v13 }
 0x2ae   :  { %v474_v12 = vpop.eup %473  ;;  %v326_v14 = vmul.f32 %v472_v11, %v320_v9  ;;  %v324_v15 = vmul.f32 %v470_v8, %v319_v10 }
 0x2af   :  { %v71_v17 = vmul.f32 0.6931472, %v474_v12  ;;  %v126_v25 = vsel %vm90_vm7, %v88_v19, 0.0 }
 0x2b0   :  { %v327_v7 = vmul.f32 -7.142857, %v324_v15  ;;  %v328_v18 = vmul.f32 -7.142857, %v326_v14 }
 0x2b1   :  { %v74_v59 = vadd.f32 %v71_v17, %v561_v49 }
 0x2b2   :  { %v329_v54 = vsel %vm90_vm7, %v327_v7, 0.0  ;;  %v330_v21 = vsel %vm90_vm7, %v328_v18, 0.0 }
 0x2b3   :  { %v89_v23 = vsub.f32 %v74_v59, %v86_v20  ;;  %v331_v24 = vadd.f32 %v330_v21, %v329_v54 }
 0x2b5   :  { %332 = vadd.xlane.f32.xlu0 %v331_v24  ;;  %v127_v26 = vsel %vm90_vm7, %v89_v23, 0.0 }
 0x2b6   :  { %v128_v27 = vadd.f32 %v127_v26, %v126_v25 }
 0x2b8   :  { %129 = vadd.xlane.f32.xlu1 %v128_v27 }
 0x2bc   :  { %349 = vadd.xlane.f32.xlu1 %v348_v28 }
 0x2d5   :  { %v93_v29 = vpop.xlane.xlu1 %92 }
 0x2d6   :  { %v94_v49 = vrot.slane %v93_v29, 4 }
 0x2d8   :  { %v95_v30 = vadd.f32 %v94_v49, %v93_v29 }
 0x2da   :  { %v96_v33 = vrot.slane %v95_v30, 2 }
 0x2dc   :  { %v97_v34 = vadd.f32 %v96_v33, %v95_v30 }
 0x2de   :  { %v98_v35 = vrot.slane %v97_v34, 1 }
 0x2e0   :  { %v99_v22 = vadd.f32 %v98_v35, %v97_v34 }
 0x2e2   :  { %422 = vpush %v99_v22 }
 0x2ed   :  { %v112_v36 = vpop.xlane.xlu0 %111 }
 0x2ee   :  { %v113_v37 = vrot.slane %v112_v36, 4 }
 0x2f0   :  { %v114_v38 = vadd.f32 %v113_v37, %v112_v36 }
 0x2f2   :  { %v115_v39 = vrot.slane %v114_v38, 2 }
 0x2f4   :  { %v116_v40 = vadd.f32 %v115_v39, %v114_v38 }
 0x2f6   :  { %v117_v41 = vrot.slane %v116_v40, 1 }
 0x2f8   :  { %v118_v31 = vadd.f32 %v117_v41, %v116_v40 }
 0x2fa   :  { %424 = vpush %v118_v31 }
 0x313   :  { %s423_s20 = spop %422 }
 0x314   :  { %s103_s21 = smul.f32 0.125, %s423_s20 }
 0x316   :  { %373 = sst [smem:[#allocation2 + $0x2]] %s103_s21  ;;  %s123_s24 = smul.f32 0.9, %s103_s21 }
 0x32b   :  { %s425_s22 = spop %424 }
 0x32c   :  { %s122_s23 = smul.f32 0.125, %s425_s22 }
 0x32e   :  { %s124_s25 = smul.f32 0.1, %s122_s23  ;;  %375 = sst [smem:[#allocation2 + $0x3]] %s122_s23 }
 0x330   :  { %s601_s26 = sadd.f32 %s124_s25, %s123_s24 }
 0x332   :  { %371 = sst [smem:[#allocation2 + $0x1]] %s601_s26 }
 0x33e   :  { %v333_v42 = vpop.xlane.xlu0 %332 }
 0x33f   :  { %v334_v43 = vrot.slane %v333_v42, 4 }
 0x341   :  { %v335_v44 = vadd.f32 %v334_v43, %v333_v42  ;;  %v130_v45 = vpop.xlane.xlu1 %129 }
 0x342   :  { %v131_v46 = vrot.slane %v130_v45, 4 }
 0x343   :  { %v336_v47 = vrot.slane %v335_v44, 2 }
 0x344   :  { %v132_v48 = vadd.f32 %v131_v46, %v130_v45 }
 0x345   :  { %v337_v50 = vadd.f32 %v336_v47, %v335_v44  ;;  %v350_v51 = vpop.xlane.xlu1 %349 }
 0x346   :  { %v133_v52 = vrot.slane %v132_v48, 2  ;;  %v351_v53 = vrot.slane %v350_v51, 4 }
 0x347   :  { %v338_v57 = vrot.slane %v337_v50, 1 }
 0x348   :  { %v352_v55 = vadd.f32 %v351_v53, %v350_v51  ;;  %v134_v56 = vadd.f32 %v133_v52, %v132_v48 }
 0x349   :  { %v339_v63 = vadd.f32 %v338_v57, %v337_v50 }
 0x34a   :  { %v353_v58 = vrot.slane %v352_v55, 2  ;;  %v135_v60 = vrot.slane %v134_v56, 1 }
 0x34c   :  { %v354_v61 = vadd.f32 %v353_v58, %v352_v55  ;;  %v136_v62 = vadd.f32 %v135_v60, %v134_v56 }
 0x34e   :  { %426 = vpush %v136_v62  ;;  %v355_v0 = vrot.slane %v354_v61, 1 }
 0x34f   :  { %428 = vpush %v339_v63 }
 0x350   :  { %v356_v1 = vadd.f32 %v355_v0, %v354_v61 }
 0x352   :  { %430 = vpush %v356_v1 }
 0x37f   :  { %s427_s27 = spop %426 }
 0x380   :  { %s140_s28 = smul.f32 0.0625, %s427_s27  ;;  %s429_s29 = spop %428 }
 0x381   :  { %s343_s30 = smul.f32 0.0625, %s429_s29 }
 0x382   :  { %379 = sst [smem:[#allocation2 + $0x5]] %s140_s28  ;;  %s364_s7 = smul.f32 0.3, %s140_s28 }
 0x383   :  { %s362_s3 = smul.f32 0.5, %s343_s30  ;;  %377 = sst [smem:[#allocation2 + $0x4]] %s343_s30 }
 0x384   :  { %s431_s4 = spop %430 }
 0x385   :  { %s363_s5 = sadd.f32 %s362_s3, %s601_s26  ;;  %s360_s6 = smul.f32 0.125, %s431_s4 }
 0x387   :  { %s361_s8 = ssub.f32 1.0, %s360_s6 }
 0x388   :  { %s365_s12 = ssub.f32 %s363_s5, %s364_s7 }
 0x389   :  { %s366_s13 = smul.f32 0.2, %s361_s8  ;;  %381 = sst [smem:[#allocation2 + $0x6]] %s361_s8 }
 0x38b   :  { %s367_s14 = sadd.f32 %s366_s13, %s365_s12 }
 0x38d   :  { %369 = sst [smem:[#allocation2]] %s367_s14 }
 0x38e   :  { %486 = shalt.err (!%p483_p4)
}
 0x38f   :  { %s493_s16 = smov [#allocation2]  }
 0x390   :  { %393 = dma.smem_to_vmem %s493_s16, 16, %s391_s11, [#allocation3]  }
 0x391   :  { %487 = dma.done.wait [#allocation3], 16  }
 0x392   :  { %488 = vsyncadd [#allocation3], 4294967280 }
 0x393   :  { %397 = sfence }
 0x394   :  { %398 = vsyncpa [#allocation3], 1 }

</bundles_post_ra>
